<compile_context>
chip_gen: v5e
topology: v5e:2x2
jax: 0.10.0
libtpu: 0.0.40
codegen_flags: <defaults>
</compile_context>

<pallas_src>
import functools
import math

import jax
import jax.numpy as jnp
from jax.experimental import pallas as pl
from jax.experimental.pallas import tpu as pltpu


# --------------------------------------------------------------------------
# Fused MHA kernel. Grid = (batch, Sq-tile).
# --------------------------------------------------------------------------
def _fused_mha_kernel(q_ref, k_ref, v_ref,
                      wq_ref, bq_ref, wk_ref, bk_ref, wv_ref, bv_ref,
                      wo_ref, bo_ref,
                      o_ref,
                      kpT_ref, vp_ref,
                      *, num_heads, head_dim, scale, compute_dtype):
    # q_ref: (tq, E); k_ref/v_ref: (Sk, E); w*: (E, E); b*: (1, E); o_ref: (tq, E)
    # kpT_ref: (E, Sk), vp_ref: (Sk, E) -- per-batch-resident VMEM scratch.
    qi = pl.program_id(1)

    # K/V projection + one XLU transpose, once per batch element; reused by
    # every Sq tile of that batch element.
    @pl.when(qi == 0)
    def _():
        kp = jnp.dot(k_ref[...], wk_ref[...],
                     preferred_element_type=jnp.float32) + bk_ref[...]
        vp = jnp.dot(v_ref[...], wv_ref[...],
                     preferred_element_type=jnp.float32) + bv_ref[...]
        kpT_ref[...] = jnp.transpose(kp).astype(kpT_ref.dtype)   # (E, Sk)
        vp_ref[...] = vp.astype(vp_ref.dtype)                    # (Sk, E)

    # Q projection; fold 1/sqrt(Dh) into qp once.
    qp = jnp.dot(q_ref[...], wq_ref[...],
                 preferred_element_type=jnp.float32) + bq_ref[...]
    qp = (qp * scale).astype(compute_dtype)                      # (tq, E)

    kpT = kpT_ref[...]
    vp = vp_ref[...]

    # Per-head sigmoid attention; heads are static lane / sublane slabs.
    ctx_heads = []
    for h in range(num_heads):
        lo = h * head_dim
        hi = lo + head_dim
        qh = qp[:, lo:hi]                              # (tq, Dh)
        kT_h = kpT[lo:hi, :]                           # (Dh, Sk) sublane slab
        scores = jnp.dot(qh, kT_h,
                         preferred_element_type=jnp.float32)      # (tq, Sk)
        # sigmoid(x) = 1 / (1 + exp(-x)); exp + reciprocal use the EUP slot.
        attn = pl.reciprocal(1.0 + jnp.exp(-scores))              # f32
        ctx_heads.append(
            jnp.dot(attn.astype(compute_dtype), vp[:, lo:hi],
                    preferred_element_type=jnp.float32))          # (tq, Dh)

    # Head merge once, then a single full-width (K = E) output projection.
    ctx = jnp.concatenate(ctx_heads, axis=-1).astype(compute_dtype)  # (tq, E)
    out = jnp.dot(ctx, wo_ref[...],
                  preferred_element_type=jnp.float32) + bo_ref[...]
    o_ref[...] = out.astype(o_ref.dtype)


def multihead_attention(params, query, key, value, num_heads, *,
                        compute_dtype=jnp.float32, block_q=128):
    """query: (B, Sq, E), key/value: (B, Sk, E) -> (B, Sq, E)."""
    B, Sq, E = query.shape
    Sk = key.shape[1]
    assert E % num_heads == 0, "embed_dim must be divisible by num_heads"
    head_dim = E // num_heads
    scale = 1.0 / math.sqrt(head_dim)
    out_dtype = query.dtype

    block_q = min(block_q, Sq)           # keep a multiple of 8 (or == Sq)
    nq = pl.cdiv(Sq, block_q)

    # bf16 feeds the MXU at native rate; all accumulation / bias / sigmoid
    # stay f32 inside the kernel. f32 path used for strict correctness check.
    q = query.astype(compute_dtype)
    k = key.astype(compute_dtype)
    v = value.astype(compute_dtype)
    cast_w = lambda w: w.astype(compute_dtype)     # noqa: E731
    cast_b = lambda b: b.astype(jnp.float32)       # noqa: E731

    kern = functools.partial(_fused_mha_kernel,
                             num_heads=num_heads, head_dim=head_dim,
                             scale=scale, compute_dtype=compute_dtype)

    q_spec = pl.BlockSpec((None, block_q, E), lambda b, i: (b, i, 0))
    kv_spec = pl.BlockSpec((None, Sk, E), lambda b, i: (b, 0, 0))
    w_spec = pl.BlockSpec((E, E), lambda b, i: (0, 0))     # resident weights
    b_spec = pl.BlockSpec((1, E), lambda b, i: (0, 0))     # resident biases

    return pl.pallas_call(
        kern,
        out_shape=jax.ShapeDtypeStruct((B, Sq, E), out_dtype),
        grid=(B, nq),
        in_specs=[q_spec, kv_spec, kv_spec,
                  w_spec, b_spec,   # wq, bq
                  w_spec, b_spec,   # wk, bk
                  w_spec, b_spec,   # wv, bv
                  w_spec, b_spec],  # wo, bo
        out_specs=pl.BlockSpec((None, block_q, E), lambda b, i: (b, i, 0)),
        scratch_shapes=[pltpu.VMEM((E, Sk), compute_dtype),   # kpT
                        pltpu.VMEM((Sk, E), compute_dtype)],  # vp
        compiler_params=pltpu.CompilerParams(
            dimension_semantics=("parallel", "arbitrary")),
    )(q, k, v,
      cast_w(params["wq"]), cast_b(params["bq"]),
      cast_w(params["wk"]), cast_b(params["bk"]),
      cast_w(params["wv"]), cast_b(params["bv"]),
      cast_w(params["wo"]), cast_b(params["bo"]))


# --------------------------------------------------------------------------
# Params (nn.Linear-style init), weights stored transposed: (in, out)
# --------------------------------------------------------------------------
def init_mha_params(key, embed_dim):
    bound = 1.0 / math.sqrt(embed_dim)
    ks = jax.random.split(key, 8)

    def lin(kw, kb):
        w = jax.random.uniform(kw, (embed_dim, embed_dim), jnp.float32, -bound, bound)
        b = jax.random.uniform(kb, (1, embed_dim), jnp.float32, -bound, bound)
        return w, b

    wq, bq = lin(ks[0], ks[1])
    wk, bk = lin(ks[2], ks[3])
    wv, bv = lin(ks[4], ks[5])
    wo, bo = lin(ks[6], ks[7])
    return dict(wq=wq, bq=bq, wk=wk, bk=bk, wv=wv, bv=bv, wo=wo, bo=bo)


# --------------------------------------------------------------------------
# Pure-JAX reference (correctness check)
# --------------------------------------------------------------------------
def reference_mha(params, query, key, value, num_heads):
    B, Sq, E = query.shape
    Sk = key.shape[1]
    Dh = E // num_heads
    q = (query @ params["wq"] + params["bq"]).reshape(B, Sq, num_heads, Dh).transpose(0, 2, 1, 3)
    k = (key @ params["wk"] + params["bk"]).reshape(B, Sk, num_heads, Dh).transpose(0, 2, 1, 3)
    v = (value @ params["wv"] + params["bv"]).reshape(B, Sk, num_heads, Dh).transpose(0, 2, 1, 3)
    scores = jnp.einsum("bhqd,bhkd->bhqk", q, k) / math.sqrt(Dh)
    attn = jax.nn.sigmoid(scores)
    out = jnp.einsum("bhqk,bhkd->bhqd", attn, v)
    out = out.transpose(0, 2, 1, 3).reshape(B, Sq, E)
    return out @ params["wo"] + params["bo"]


# --------------------------------------------------------------------------
if __name__ == "__main__":
    B, S, E, H = 2, 8, 32, 4

    root = jax.random.PRNGKey(0)
    k_params, k_q, k_k, k_v = jax.random.split(root, 4)

    params = init_mha_params(k_params, E)
    query = jax.random.normal(k_q, (B, S, E), jnp.float32)
    key = jax.random.normal(k_k, (B, S, E), jnp.float32)
    value = jax.random.normal(k_v, (B, S, E), jnp.float32)

    ref = reference_mha(params, query, key, value, H)

    # f32 matmul path: strict check against the f32 reference.
    out_f32 = jax.block_until_ready(
        multihead_attention(params, query, key, value, H))
    assert out_f32.shape == (B, S, E)
    assert jnp.allclose(out_f32, ref, atol=1e-4, rtol=1e-4), "f32 mismatch vs reference"

    # bf16 matmul path (f32 accumulation): production configuration; looser tol.
    out_bf16 = jax.block_until_ready(
        multihead_attention(params, query, key, value, H,
                            compute_dtype=jnp.bfloat16))
    assert out_bf16.shape == (B, S, E)
    assert jnp.allclose(out_bf16, ref, atol=7.5e-2, rtol=7.5e-2), "bf16 mismatch vs reference"

    print("KERNEL_OK")
</pallas_src>

<mosaic_0001>
module attributes {stable_mosaic.version = 11 : i64} {
  func.func @_fused_mha_kernel(%arg0: i32, %arg1: i32, %arg2: memref<1x8x32xf32, #tpu.memory_space<vmem>>, %arg3: memref<1x8x32xf32, #tpu.memory_space<vmem>>, %arg4: memref<1x8x32xf32, #tpu.memory_space<vmem>>, %arg5: memref<32x32xf32, #tpu.memory_space<vmem>>, %arg6: memref<1x32xf32, #tpu.memory_space<vmem>>, %arg7: memref<32x32xf32, #tpu.memory_space<vmem>>, %arg8: memref<1x32xf32, #tpu.memory_space<vmem>>, %arg9: memref<32x32xf32, #tpu.memory_space<vmem>>, %arg10: memref<1x32xf32, #tpu.memory_space<vmem>>, %arg11: memref<32x32xf32, #tpu.memory_space<vmem>>, %arg12: memref<1x32xf32, #tpu.memory_space<vmem>>, %arg13: memref<1x8x32xf32, #tpu.memory_space<vmem>>, %arg14: memref<32x8xf32, #tpu.memory_space<vmem>>, %arg15: memref<8x32xf32, #tpu.memory_space<vmem>>) attributes {dimension_semantics = [#tpu.dimension_semantics<parallel>, #tpu.dimension_semantics<arbitrary>], iteration_bounds = array<i64: 2, 1>, scalar_prefetch = 0 : i64, scratch_operands = 2 : i64, tpu.core_type = #tpu.core_type<tc>, window_params = [{transform_indices = @transform_0, window_bounds = array<i64: 1, 8, 32>}, {transform_indices = @transform_1, window_bounds = array<i64: 1, 8, 32>}, {transform_indices = @transform_2, window_bounds = array<i64: 1, 8, 32>}, {pipeline_mode = #tpu.pipeline_mode<synchronous>, transform_indices = @transform_3, window_bounds = array<i64: 32, 32>}, {pipeline_mode = #tpu.pipeline_mode<synchronous>, transform_indices = @transform_4, window_bounds = array<i64: 1, 32>}, {pipeline_mode = #tpu.pipeline_mode<synchronous>, transform_indices = @transform_5, window_bounds = array<i64: 32, 32>}, {pipeline_mode = #tpu.pipeline_mode<synchronous>, transform_indices = @transform_6, window_bounds = array<i64: 1, 32>}, {pipeline_mode = #tpu.pipeline_mode<synchronous>, transform_indices = @transform_7, window_bounds = array<i64: 32, 32>}, {pipeline_mode = #tpu.pipeline_mode<synchronous>, transform_indices = @transform_8, window_bounds = array<i64: 1, 32>}, {pipeline_mode = #tpu.pipeline_mode<synchronous>, transform_indices = @transform_9, window_bounds = array<i64: 32, 32>}, {pipeline_mode = #tpu.pipeline_mode<synchronous>, transform_indices = @transform_10, window_bounds = array<i64: 1, 32>}, {transform_indices = @transform_11, window_bounds = array<i64: 1, 8, 32>}]} {
    %c0_i32 = arith.constant 0 : i32
    %0 = arith.cmpi eq, %arg1, %c0_i32 : i32
    %1 = arith.extui %0 : i1 to i32
    %c0_i32_0 = arith.constant 0 : i32
    %2 = arith.cmpi ne, %1, %c0_i32_0 : i32
    scf.if %2 {
      %c0_36 = arith.constant 0 : index
      %c0_37 = arith.constant 0 : index
      %c0_38 = arith.constant 0 : index
      %67 = vector.load %arg3[%c0_36, %c0_37, %c0_38] : memref<1x8x32xf32, #tpu.memory_space<vmem>>, vector<1x8x32xf32>
      %68 = vector.shape_cast %67 : vector<1x8x32xf32> to vector<8x32xf32>
      %c0_39 = arith.constant 0 : index
      %c0_40 = arith.constant 0 : index
      %69 = vector.load %arg7[%c0_39, %c0_40] : memref<32x32xf32, #tpu.memory_space<vmem>>, vector<32x32xf32>
      %cst_41 = arith.constant dense<0.000000e+00> : vector<8x32xf32>
      %70 = tpu.matmul %68, %69, %cst_41 {dimension_numbers = #tpu.dot_dimension_numbers<[1], [0], [0], [1], [0, 0, 1, 1], [], []>} : vector<8x32xf32>, vector<32x32xf32>, vector<8x32xf32> -> vector<8x32xf32>
      %c0_42 = arith.constant 0 : index
      %c0_43 = arith.constant 0 : index
      %71 = vector.load %arg8[%c0_42, %c0_43] : memref<1x32xf32, #tpu.memory_space<vmem>>, vector<1x32xf32>
      %72 = vector.broadcast %71 : vector<1x32xf32> to vector<8x32xf32>
      %73 = arith.addf %70, %72 : vector<8x32xf32>
      %c0_44 = arith.constant 0 : index
      %c0_45 = arith.constant 0 : index
      %c0_46 = arith.constant 0 : index
      %74 = vector.load %arg4[%c0_44, %c0_45, %c0_46] : memref<1x8x32xf32, #tpu.memory_space<vmem>>, vector<1x8x32xf32>
      %75 = vector.shape_cast %74 : vector<1x8x32xf32> to vector<8x32xf32>
      %c0_47 = arith.constant 0 : index
      %c0_48 = arith.constant 0 : index
      %76 = vector.load %arg9[%c0_47, %c0_48] : memref<32x32xf32, #tpu.memory_space<vmem>>, vector<32x32xf32>
      %cst_49 = arith.constant dense<0.000000e+00> : vector<8x32xf32>
      %77 = tpu.matmul %75, %76, %cst_49 {dimension_numbers = #tpu.dot_dimension_numbers<[1], [0], [0], [1], [0, 0, 1, 1], [], []>} : vector<8x32xf32>, vector<32x32xf32>, vector<8x32xf32> -> vector<8x32xf32>
      %c0_50 = arith.constant 0 : index
      %c0_51 = arith.constant 0 : index
      %78 = vector.load %arg10[%c0_50, %c0_51] : memref<1x32xf32, #tpu.memory_space<vmem>>, vector<1x32xf32>
      %79 = vector.broadcast %78 : vector<1x32xf32> to vector<8x32xf32>
      %80 = arith.addf %77, %79 : vector<8x32xf32>
      %81 = tpu.transpose %73, [1, 0] : vector<8x32xf32> -> vector<32x8xf32>
      %c0_52 = arith.constant 0 : index
      %c0_53 = arith.constant 0 : index
      %82 = vector.load %arg14[%c0_52, %c0_53] : memref<32x8xf32, #tpu.memory_space<vmem>>, vector<32x8xf32>
      tpu.vector_store %arg14[%c0_52, %c0_53], %81 {strides = array<i32>} : memref<32x8xf32, #tpu.memory_space<vmem>>, vector<32x8xf32>,
      %c0_54 = arith.constant 0 : index
      %c0_55 = arith.constant 0 : index
      %83 = vector.load %arg15[%c0_54, %c0_55] : memref<8x32xf32, #tpu.memory_space<vmem>>, vector<8x32xf32>
      tpu.vector_store %arg15[%c0_54, %c0_55], %80 {strides = array<i32>} : memref<8x32xf32, #tpu.memory_space<vmem>>, vector<8x32xf32>,
    } else {
    }
    %c0 = arith.constant 0 : index
    %c0_1 = arith.constant 0 : index
    %c0_2 = arith.constant 0 : index
    %3 = vector.load %arg2[%c0, %c0_1, %c0_2] : memref<1x8x32xf32, #tpu.memory_space<vmem>>, vector<1x8x32xf32>
    %4 = vector.shape_cast %3 : vector<1x8x32xf32> to vector<8x32xf32>
    %c0_3 = arith.constant 0 : index
    %c0_4 = arith.constant 0 : index
    %5 = vector.load %arg5[%c0_3, %c0_4] : memref<32x32xf32, #tpu.memory_space<vmem>>, vector<32x32xf32>
    %cst = arith.constant dense<0.000000e+00> : vector<8x32xf32>
    %6 = tpu.matmul %4, %5, %cst {dimension_numbers = #tpu.dot_dimension_numbers<[1], [0], [0], [1], [0, 0, 1, 1], [], []>} : vector<8x32xf32>, vector<32x32xf32>, vector<8x32xf32> -> vector<8x32xf32>
    %c0_5 = arith.constant 0 : index
    %c0_6 = arith.constant 0 : index
    %7 = vector.load %arg6[%c0_5, %c0_6] : memref<1x32xf32, #tpu.memory_space<vmem>>, vector<1x32xf32>
    %8 = vector.broadcast %7 : vector<1x32xf32> to vector<8x32xf32>
    %9 = arith.addf %6, %8 : vector<8x32xf32>
    %cst_7 = arith.constant 0.353553385 : f32
    %10 = vector.broadcast %cst_7 : f32 to vector<8x32xf32>
    %11 = arith.mulf %9, %10 : vector<8x32xf32>
    %c0_8 = arith.constant 0 : index
    %c0_9 = arith.constant 0 : index
    %12 = vector.load %arg14[%c0_8, %c0_9] : memref<32x8xf32, #tpu.memory_space<vmem>>, vector<32x8xf32>
    %c0_10 = arith.constant 0 : index
    %c0_11 = arith.constant 0 : index
    %13 = vector.load %arg15[%c0_10, %c0_11] : memref<8x32xf32, #tpu.memory_space<vmem>>, vector<8x32xf32>
    %14 = vector.extract_strided_slice %11 {offsets = [0, 0], sizes = [8, 8], strides = [1, 1]} : vector<8x32xf32> to vector<8x8xf32>
    %15 = vector.extract_strided_slice %12 {offsets = [0, 0], sizes = [8, 8], strides = [1, 1]} : vector<32x8xf32> to vector<8x8xf32>
    %cst_12 = arith.constant dense<0.000000e+00> : vector<8x8xf32>
    %16 = tpu.matmul %14, %15, %cst_12 {dimension_numbers = #tpu.dot_dimension_numbers<[1], [0], [0], [1], [0, 0, 1, 1], [], []>} : vector<8x8xf32>, vector<8x8xf32>, vector<8x8xf32> -> vector<8x8xf32>
    %cst_13 = arith.constant 0.000000e+00 : f32
    %17 = vector.broadcast %cst_13 : f32 to vector<8x8xf32>
    %18 = arith.subf %17, %16 : vector<8x8xf32>
    %19 = math.exp %18 : vector<8x8xf32>
    %cst_14 = arith.constant 1.000000e+00 : f32
    %20 = vector.broadcast %cst_14 : f32 to vector<8x8xf32>
    %21 = arith.addf %20, %19 : vector<8x8xf32>
    %22 = tpu.reciprocal %21 : vector<8x8xf32> -> vector<8x8xf32>
    %23 = vector.extract_strided_slice %13 {offsets = [0, 0], sizes = [8, 8], strides = [1, 1]} : vector<8x32xf32> to vector<8x8xf32>
    %cst_15 = arith.constant dense<0.000000e+00> : vector<8x8xf32>
    %24 = tpu.matmul %22, %23, %cst_15 {dimension_numbers = #tpu.dot_dimension_numbers<[1], [0], [0], [1], [0, 0, 1, 1], [], []>} : vector<8x8xf32>, vector<8x8xf32>, vector<8x8xf32> -> vector<8x8xf32>
    %25 = vector.extract_strided_slice %11 {offsets = [0, 8], sizes = [8, 8], strides = [1, 1]} : vector<8x32xf32> to vector<8x8xf32>
    %26 = vector.extract_strided_slice %12 {offsets = [8, 0], sizes = [8, 8], strides = [1, 1]} : vector<32x8xf32> to vector<8x8xf32>
    %cst_16 = arith.constant dense<0.000000e+00> : vector<8x8xf32>
    %27 = tpu.matmul %25, %26, %cst_16 {dimension_numbers = #tpu.dot_dimension_numbers<[1], [0], [0], [1], [0, 0, 1, 1], [], []>} : vector<8x8xf32>, vector<8x8xf32>, vector<8x8xf32> -> vector<8x8xf32>
    %cst_17 = arith.constant 0.000000e+00 : f32
    %28 = vector.broadcast %cst_17 : f32 to vector<8x8xf32>
    %29 = arith.subf %28, %27 : vector<8x8xf32>
    %30 = math.exp %29 : vector<8x8xf32>
    %cst_18 = arith.constant 1.000000e+00 : f32
    %31 = vector.broadcast %cst_18 : f32 to vector<8x8xf32>
    %32 = arith.addf %31, %30 : vector<8x8xf32>
    %33 = tpu.reciprocal %32 : vector<8x8xf32> -> vector<8x8xf32>
    %34 = vector.extract_strided_slice %13 {offsets = [0, 8], sizes = [8, 8], strides = [1, 1]} : vector<8x32xf32> to vector<8x8xf32>
    %cst_19 = arith.constant dense<0.000000e+00> : vector<8x8xf32>
    %35 = tpu.matmul %33, %34, %cst_19 {dimension_numbers = #tpu.dot_dimension_numbers<[1], [0], [0], [1], [0, 0, 1, 1], [], []>} : vector<8x8xf32>, vector<8x8xf32>, vector<8x8xf32> -> vector<8x8xf32>
    %36 = vector.extract_strided_slice %11 {offsets = [0, 16], sizes = [8, 8], strides = [1, 1]} : vector<8x32xf32> to vector<8x8xf32>
    %37 = vector.extract_strided_slice %12 {offsets = [16, 0], sizes = [8, 8], strides = [1, 1]} : vector<32x8xf32> to vector<8x8xf32>
    %cst_20 = arith.constant dense<0.000000e+00> : vector<8x8xf32>
    %38 = tpu.matmul %36, %37, %cst_20 {dimension_numbers = #tpu.dot_dimension_numbers<[1], [0], [0], [1], [0, 0, 1, 1], [], []>} : vector<8x8xf32>, vector<8x8xf32>, vector<8x8xf32> -> vector<8x8xf32>
    %cst_21 = arith.constant 0.000000e+00 : f32
    %39 = vector.broadcast %cst_21 : f32 to vector<8x8xf32>
    %40 = arith.subf %39, %38 : vector<8x8xf32>
    %41 = math.exp %40 : vector<8x8xf32>
    %cst_22 = arith.constant 1.000000e+00 : f32
    %42 = vector.broadcast %cst_22 : f32 to vector<8x8xf32>
    %43 = arith.addf %42, %41 : vector<8x8xf32>
    %44 = tpu.reciprocal %43 : vector<8x8xf32> -> vector<8x8xf32>
    %45 = vector.extract_strided_slice %13 {offsets = [0, 16], sizes = [8, 8], strides = [1, 1]} : vector<8x32xf32> to vector<8x8xf32>
    %cst_23 = arith.constant dense<0.000000e+00> : vector<8x8xf32>
    %46 = tpu.matmul %44, %45, %cst_23 {dimension_numbers = #tpu.dot_dimension_numbers<[1], [0], [0], [1], [0, 0, 1, 1], [], []>} : vector<8x8xf32>, vector<8x8xf32>, vector<8x8xf32> -> vector<8x8xf32>
    %47 = vector.extract_strided_slice %11 {offsets = [0, 24], sizes = [8, 8], strides = [1, 1]} : vector<8x32xf32> to vector<8x8xf32>
    %48 = vector.extract_strided_slice %12 {offsets = [24, 0], sizes = [8, 8], strides = [1, 1]} : vector<32x8xf32> to vector<8x8xf32>
    %cst_24 = arith.constant dense<0.000000e+00> : vector<8x8xf32>
    %49 = tpu.matmul %47, %48, %cst_24 {dimension_numbers = #tpu.dot_dimension_numbers<[1], [0], [0], [1], [0, 0, 1, 1], [], []>} : vector<8x8xf32>, vector<8x8xf32>, vector<8x8xf32> -> vector<8x8xf32>
    %cst_25 = arith.constant 0.000000e+00 : f32
    %50 = vector.broadcast %cst_25 : f32 to vector<8x8xf32>
    %51 = arith.subf %50, %49 : vector<8x8xf32>
    %52 = math.exp %51 : vector<8x8xf32>
    %cst_26 = arith.constant 1.000000e+00 : f32
    %53 = vector.broadcast %cst_26 : f32 to vector<8x8xf32>
    %54 = arith.addf %53, %52 : vector<8x8xf32>
    %55 = tpu.reciprocal %54 : vector<8x8xf32> -> vector<8x8xf32>
    %56 = vector.extract_strided_slice %13 {offsets = [0, 24], sizes = [8, 8], strides = [1, 1]} : vector<8x32xf32> to vector<8x8xf32>
    %cst_27 = arith.constant dense<0.000000e+00> : vector<8x8xf32>
    %57 = tpu.matmul %55, %56, %cst_27 {dimension_numbers = #tpu.dot_dimension_numbers<[1], [0], [0], [1], [0, 0, 1, 1], [], []>} : vector<8x8xf32>, vector<8x8xf32>, vector<8x8xf32> -> vector<8x8xf32>
    %58 = tpu.concatenate %24, %35, %46, %57 in 1 : vector<8x8xf32>, vector<8x8xf32>, vector<8x8xf32>, vector<8x8xf32> -> vector<8x32xf32>
    %c0_28 = arith.constant 0 : index
    %c0_29 = arith.constant 0 : index
    %59 = vector.load %arg11[%c0_28, %c0_29] : memref<32x32xf32, #tpu.memory_space<vmem>>, vector<32x32xf32>
    %cst_30 = arith.constant dense<0.000000e+00> : vector<8x32xf32>
    %60 = tpu.matmul %58, %59, %cst_30 {dimension_numbers = #tpu.dot_dimension_numbers<[1], [0], [0], [1], [0, 0, 1, 1], [], []>} : vector<8x32xf32>, vector<32x32xf32>, vector<8x32xf32> -> vector<8x32xf32>
    %c0_31 = arith.constant 0 : index
    %c0_32 = arith.constant 0 : index
    %61 = vector.load %arg12[%c0_31, %c0_32] : memref<1x32xf32, #tpu.memory_space<vmem>>, vector<1x32xf32>
    %62 = vector.broadcast %61 : vector<1x32xf32> to vector<8x32xf32>
    %63 = arith.addf %60, %62 : vector<8x32xf32>
    %c0_33 = arith.constant 0 : index
    %c0_34 = arith.constant 0 : index
    %c0_35 = arith.constant 0 : index
    %64 = vector.load %arg13[%c0_33, %c0_34, %c0_35] : memref<1x8x32xf32, #tpu.memory_space<vmem>>, vector<1x8x32xf32>
    %65 = vector.shape_cast %64 : vector<1x8x32xf32> to vector<8x32xf32>
    %66 = vector.shape_cast %63 : vector<8x32xf32> to vector<1x8x32xf32>
    tpu.vector_store %arg13[%c0_33, %c0_34, %c0_35], %66 {strides = array<i32>} : memref<1x8x32xf32, #tpu.memory_space<vmem>>, vector<1x8x32xf32>,
    return
  }
  func.func @transform_0(%arg0: i32, %arg1: i32) -> (i32, i32, i32) {
    %c0_i32 = arith.constant 0 : i32
    %c0_i32_0 = arith.constant 0 : i32
    return %arg0, %arg1, %c0_i32 : i32, i32, i32
  }
  func.func @transform_1(%arg0: i32, %arg1: i32) -> (i32, i32, i32) {
    %c0_i32 = arith.constant 0 : i32
    %c0_i32_0 = arith.constant 0 : i32
    %c0_i32_1 = arith.constant 0 : i32
    return %arg0, %c0_i32, %c0_i32_0 : i32, i32, i32
  }
  func.func @transform_2(%arg0: i32, %arg1: i32) -> (i32, i32, i32) {
    %c0_i32 = arith.constant 0 : i32
    %c0_i32_0 = arith.constant 0 : i32
    %c0_i32_1 = arith.constant 0 : i32
    return %arg0, %c0_i32, %c0_i32_0 : i32, i32, i32
  }
  func.func @transform_3(%arg0: i32, %arg1: i32) -> (i32, i32) {
    %c0_i32 = arith.constant 0 : i32
    %c0_i32_0 = arith.constant 0 : i32
    %c0_i32_1 = arith.constant 0 : i32
    return %c0_i32, %c0_i32_0 : i32, i32
  }
  func.func @transform_4(%arg0: i32, %arg1: i32) -> (i32, i32) {
    %c0_i32 = arith.constant 0 : i32
    %c0_i32_0 = arith.constant 0 : i32
    %c0_i32_1 = arith.constant 0 : i32
    return %c0_i32, %c0_i32_0 : i32, i32
  }
  func.func @transform_5(%arg0: i32, %arg1: i32) -> (i32, i32) {
    %c0_i32 = arith.constant 0 : i32
    %c0_i32_0 = arith.constant 0 : i32
    %c0_i32_1 = arith.constant 0 : i32
    return %c0_i32, %c0_i32_0 : i32, i32
  }
  func.func @transform_6(%arg0: i32, %arg1: i32) -> (i32, i32) {
    %c0_i32 = arith.constant 0 : i32
    %c0_i32_0 = arith.constant 0 : i32
    %c0_i32_1 = arith.constant 0 : i32
    return %c0_i32, %c0_i32_0 : i32, i32
  }
  func.func @transform_7(%arg0: i32, %arg1: i32) -> (i32, i32) {
    %c0_i32 = arith.constant 0 : i32
    %c0_i32_0 = arith.constant 0 : i32
    %c0_i32_1 = arith.constant 0 : i32
    return %c0_i32, %c0_i32_0 : i32, i32
  }
  func.func @transform_8(%arg0: i32, %arg1: i32) -> (i32, i32) {
    %c0_i32 = arith.constant 0 : i32
    %c0_i32_0 = arith.constant 0 : i32
    %c0_i32_1 = arith.constant 0 : i32
    return %c0_i32, %c0_i32_0 : i32, i32
  }
  func.func @transform_9(%arg0: i32, %arg1: i32) -> (i32, i32) {
    %c0_i32 = arith.constant 0 : i32
    %c0_i32_0 = arith.constant 0 : i32
    %c0_i32_1 = arith.constant 0 : i32
    return %c0_i32, %c0_i32_0 : i32, i32
  }
  func.func @transform_10(%arg0: i32, %arg1: i32) -> (i32, i32) {
    %c0_i32 = arith.constant 0 : i32
    %c0_i32_0 = arith.constant 0 : i32
    %c0_i32_1 = arith.constant 0 : i32
    return %c0_i32, %c0_i32_0 : i32, i32
  }
  func.func @transform_11(%arg0: i32, %arg1: i32) -> (i32, i32, i32) {
    %c0_i32 = arith.constant 0 : i32
    %c0_i32_0 = arith.constant 0 : i32
    return %arg0, %arg1, %c0_i32 : i32, i32, i32
  }
}

</mosaic_0001>

<bundles_post_ra>
// kernel: tpu_custom_call.1
= control target key start
LH: loop header
LB: loop body
LE: loop exit
PB: predicated region body
PF: predicated region fallthrough
CT: control target
= control target key end

     0   :  { %s2026_s0 = inlined_call_operand.hbm [shape: f32[2,8,32], index: 0, kind: input, shape index: {}]   ;;  %s2027_s1 = inlined_call_operand.hbm [shape: f32[2,8,32], index: 1, kind: input, shape index: {}]   ;;  %s2028_s2 = inlined_call_operand.hbm [shape: f32[2,8,32], index: 2, kind: input, shape index: {}]   ;;  %s2029_s3 = inlined_call_operand.hbm [shape: f32[32,32], index: 3, kind: input, shape index: {}]   ;;  %s2030_s4 = inlined_call_operand.vmem [shape: f32[1,32], index: 4, kind: input, shape index: {}]   ;;  %s2031_s5 = inlined_call_operand.hbm [shape: f32[32,32], index: 5, kind: input, shape index: {}]   ;;  %s2032_s6 = inlined_call_operand.vmem [shape: f32[1,32], index: 6, kind: input, shape index: {}]   ;;  %s2033_s7 = inlined_call_operand.hbm [shape: f32[32,32], index: 7, kind: input, shape index: {}]   ;;  %s2034_s8 = inlined_call_operand.vmem [shape: f32[1,32], index: 8, kind: input, shape index: {}]   ;;  %s2035_s9 = inlined_call_operand.hbm [shape: f32[32,32], index: 9, kind: input, shape index: {}]   ;;  %s2036_s10 = inlined_call_operand.vmem [shape: f32[1,32], index: 10, kind: input, shape index: {}]   ;;  %s2037_s11 = inlined_call_operand.hbm [shape: f32[2,8,32], index: 11, kind: output, shape index: {}]  }
   0x1   :  { %2051 = sst [smem:[#allocation29_spill]] %s2026_s0 }
   0x2   :  { %2052 = sst [smem:[#allocation30_spill]] %s2027_s1 }
   0x3   :  { %2053 = sst [smem:[#allocation31_spill]] %s2029_s3 }
   0x4   :  { %2054 = sst [smem:[#allocation32_spill]] %s2031_s5 }
   0x5   :  { %2055 = sst [smem:[#allocation33_spill]] %s2033_s7 }
   0x6   :  { %2056 = sst [smem:[#allocation34_spill]] %s2035_s9 }
   0x7   :  { %2057 = sst [smem:[#allocation35_spill]] %s2036_s10 }
   0x8   :  { %16 = vsyncpa [#allocation5], 0 }
   0x9   :  { %18 = vsyncpa [#allocation5 + $0x1], 0 }
   0xa   :  { %19 = vsyncpa [#allocation8], 0 }
   0xb   :  { %21 = vsyncpa [#allocation8 + $0x1], 0 }
   0xc   :  { %22 = vsyncpa [#allocation11], 0 }
   0xd   :  { %23 = vsyncpa [#allocation14], 0 }
   0xe   :  { %24 = vsyncpa [#allocation6], 0 }
   0xf   :  { %26 = vsyncpa [#allocation6 + $0x1], 0  ;;  %s1764_s17 = smov 0   ;;  %s1766_s18 = smov 0  }
  0x10   :  { %s1768_s19 = smov 0   ;;  %s1770_s20 = smov 0  }
  0x11   :  { %s1772_s21 = smov 0   ;;  %s1774_s22 = smov 0  }
  0x12 LB: > { %2058 = sst [smem:[#allocation22_spill]] %s1670_s17  ;;  %s1795_s23 = sadd.s32 4294967295, %s1690_s22   ;;  %s1690_s22 = sphi %s1774_s22, %s32_s22   ;;  %s1686_s21 = sphi %s1772_s21, %s2092_s21   ;;  %s1682_s20 = sphi %s1770_s20, %s2087_s20   ;;  %s1678_s19 = sphi %s1768_s19, %s2091_s19   ;;  %s1674_s18 = sphi %s1766_s18, %s2090_s18   ;;  %s1670_s17 = sphi %s1764_s17, %s2089_s17  }
  0x13   : > { %2059 = sst [smem:[#allocation23_spill]] %s1686_s21  ;;  %p1207_p0 = scmp.ge.s32.totalorder %s1690_s22, 1 }
  0x14   : > { %2060 = sst [smem:[#allocation24_spill]] %s1690_s22  ;;  %p67_p1 = scmp.eq.s32.totalorder %s1795_s23, 0 }
  0x15   : > { %p325_p2 = scmp.lt.s32.totalorder %s1690_s22, 3  ;;  %s2061_s3 = sld [smem:[#allocation31_spill]] }
  0x16   : > { %s1692_s28 = smov [#allocation10]   ;;  %p1212_p6 = scmp.ge.s32.totalorder %s1690_s22, 2 }
  0x17   : > { %p1803_p3 = pnand %p1207_p0, %p325_p2  ;;  %s338_s29 = sshll.u32 %s1692_s28, 4  ;;  %s339_s29 = int_to_ptr.vmem [resolvable:$true] %s338_s29 }
  0x18   : > { %s2064_s7 = sld [smem:[#allocation33_spill]]  ;;  %s2038_s15 = smov 128  }
  0x19   : > { %p1268_p4 = pneg %p1803_p3  ;;  %s2040_s16 = smov 8  }
  0x1a   : > { %s1695_s24 = smov [#allocation13]   ;;  %s1206_s28 = sadd.s32 4294967294, %s1690_s22  }
  0x1b   : > { %s336_s26 = sshll.u32 %s2061_s3, 4  ;;  %p1811_p5 = pnand %p1268_p4, %p67_p1  ;;  %s337_s26 = int_to_ptr.hbm [resolvable:$true] %s336_s26 }
  0x1c   : > { %s372_s25 = sshll.u32 %s1695_s24, 4  ;;  %s44_s12 = sadd.s32 1, %s1686_s21  ;;  %s373_s25 = int_to_ptr.vmem [resolvable:$true] %s372_s25 }
  0x1d   : > { %1271 = dma.hbm_to_vmem [thread:$0]  (!%p1811_p5), %s337_s26, 512, %s339_s29, [#allocation11], %s2038_s15, %s2038_s15, %s2040_s16  }
  0x1e   : > { %s370_s14 = sshll.u32 %s2064_s7, 4  ;;  %p46_p7 = scmp.ge.s32.totalorder %s44_s12, 2  ;;  %s371_s14 = int_to_ptr.hbm [resolvable:$true] %s370_s14 }
  0x1f   : > { %1277 = dma.hbm_to_vmem [thread:$0]  (!%p1811_p5), %s371_s14, 512, %s373_s25, [#allocation14], %s2038_s15, %s2038_s15, %s2040_s16  }
  0x20   : > { %s53_s13 = sadd.s32 1, %s1678_s19  ;;  %p60_p8 = scmp.ne.s32.totalorder %s1678_s19, %s1674_s18 }
  0x21   : > { %p61_p9 = scmp.eq.s32.totalorder %s1690_s22, 0  ;;  %s2094_s12 = smov (%p46_p7, %s44_s12), 0 }
  0x22   : > { %2065 = sst [smem:[#allocation25_spill]] %s2094_s12  ;;  %p66_p11 = scmp.ne.s32.totalorder %s1674_s18, %s1670_s17 }
  0x23   : > { %p1837_p10 = por %p61_p9, %p60_p8  ;;  %s48_s29 = ssub.s32 %s1686_s21, %s2094_s12 }
  0x24   : > { %p312_p12 = scmp.eq.s32.totalorder %s1795_s23, 1  ;;  %p51_p13 = scmp.eq.s32.totalorder %s48_s29, 0 }
  0x25   : > { %p1848_p0 = por %p67_p1, %p66_p11  ;;  %p318_p4 = scmp.eq.s32.totalorder %s1206_s28, 1 }
  0x26   : > { %p1852_p2 = por %p312_p12, %p60_p8  ;;  %p1299_p9 = scmp.lt.s32.totalorder %s1690_s22, 2 }
  0x27   : > { %s1857_s25 = scalar_select %p51_p13, %s1678_s19, %s53_s13  }
  0x28   : > { %s2068_s24 = scalar_select %p1852_p2, 1, 0 }
  0x29   : > { %2070 = sst [smem:[#allocation27_spill]] %s1857_s25  ;;  %p1859_p7 = por %p318_p4, %p66_p11 }
  0x2a   : > { %2069 = sst [smem:[#allocation26_spill]] %s2068_s24  ;;  %s2046_s16 = sand.u32 1, %s1678_s19  }
  0x2b   : > { %s2071_s15 = scalar_select %p1859_p7, 1, 0 }
  0x2c   : > { %s1866_s3 = sshll.u32 %s1686_s21, 3  ;;  %s1870_s29 = sshll.u32 %s2046_s16, 3 }
  0x2d   : > { %2072 = sst [smem:[#allocation28_spill]] %s2071_s15  ;;  %p1874_p8 = pnand %p1299_p9, %p1837_p10 }
  0x2e   : > { %s426_s28 = sand.u32 1, %s1690_s22   ;;  %s2074_s1 = sld [smem:[#allocation30_spill]] }
  0x2f   : > { %s430_s15 = scalar_lea.vmem [#allocation7], %s1870_s29  ;;  %s2075_s5 = sld [smem:[#allocation32_spill]] }
  0x30   : > { %s438_s21 = sshll.u32 %s430_s15, 4  ;;  %s427_s24 = scalar_lea.sflag [#allocation8], %s426_s28  ;;  %s439_s21 = int_to_ptr.vmem [resolvable:$true] %s438_s21 }
  0x31   : > { %s1696_s22 = smov [#allocation12]   ;;  %s2076_s9 = sld [smem:[#allocation34_spill]] }
  0x32   : > { %s355_s12 = sshll.u32 %s1696_s22, 4  ;;  %s2078_s16 = smov 128   ;;  %s356_s12 = int_to_ptr.vmem [resolvable:$true] %s355_s12 }
  0x33   : > { %s1697_s28 = smov [#allocation15]   ;;  %s2079_s0 = sld [smem:[#allocation29_spill]] }
  0x34   : > { %s434_s25 = scalar_lea.hbm %s2074_s1, %s1866_s3  ;;  %s410_s13 = scalar_lea.vmem [#allocation4], %s1870_s29 }
  0x35   : > { %s436_s17 = sshll.u32 %s434_s25, 4  ;;  %s353_s10 = sshll.u32 %s2075_s5, 4  ;;  %s437_s17 = int_to_ptr.hbm [resolvable:$true] %s436_s17  ;;  %s354_s10 = int_to_ptr.hbm [resolvable:$true] %s353_s10 }
  0x36   : > { %1287 = dma.hbm_to_vmem [thread:$0]  (!%p1874_p8), %s437_s17, 128, %s439_s21, %s427_s24  }
  0x37   : > { %s387_s15 = sshll.u32 %s2076_s9, 4  ;;  %s2077_s25 = smov 8   ;;  %s388_s15 = int_to_ptr.hbm [resolvable:$true] %s387_s15 }
  0x38   : > { %1274 = dma.hbm_to_vmem [thread:$0]  (!%p1811_p5), %s354_s10, 512, %s356_s12, [#allocation11], %s2078_s16, %s2078_s16, %s2077_s25  }
  0x39   : > { %s389_s17 = sshll.u32 %s1697_s28, 4  ;;  %s415_s22 = scalar_lea.hbm %s2079_s0, %s1866_s3  ;;  %s390_s17 = int_to_ptr.vmem [resolvable:$true] %s389_s17 }
  0x3a   : > { %1280 = dma.hbm_to_vmem [thread:$0]  (!%p1811_p5), %s388_s15, 512, %s390_s17, [#allocation14], %s2078_s16, %s2078_s16, %s2077_s25  }
  0x3b   : > { %s417_s1 = sshll.u32 %s415_s22, 4  ;;  %s419_s5 = sshll.u32 %s410_s13, 4  ;;  %s418_s1 = int_to_ptr.hbm [resolvable:$true] %s417_s1  ;;  %s420_s5 = int_to_ptr.vmem [resolvable:$true] %s419_s5 }
  0x3c   : > { %s2080_s9 = sand.u32 1, %s1678_s19   ;;  %s453_s21 = scalar_lea.hbm %s2028_s2, %s1866_s3 }
  0x3d   : > { %s407_s10 = scalar_lea.sflag [#allocation5], %s2080_s9  ;;  %s455_s26 = sshll.u32 %s453_s21, 4  ;;  %s456_s26 = int_to_ptr.hbm [resolvable:$true] %s455_s26 }
  0x3e   : > { %1284 = dma.hbm_to_vmem [thread:$0]  (!%p1874_p8), %s418_s1, 128, %s420_s5, %s407_s10  }
  0x3f   : > { %s449_s0 = scalar_lea.vmem [#allocation9], %s1870_s29  ;;  %466 = sbr.rel (%p1803_p3) target bundleno = 952 (0x3b8), region = 64 }
  0x40   : > { %s457_s30 = sshll.u32 %s449_s0, 4  ;;  %s1921_s15 = sand.u32 (!%p1803_p3), 1, %s1674_s18   ;;  %s458_s30 = int_to_ptr.vmem [resolvable:$true] %s457_s30 }
  0x41   : > { %1290 = dma.hbm_to_vmem [thread:$0]  (!%p1874_p8), %s456_s26, 128, %s458_s30, %s427_s24  }
  0x42   : > { %s1924_s5 = sshll.u32 (!%p1803_p3), %s1921_s15, 3  ;;  %s469_s3 = scalar_lea.sflag (!%p1803_p3), [#allocation5], %s1921_s15 }
  0x43   : > { %s472_s9 = scalar_lea.vmem (!%p1803_p3), [#allocation4], %s1924_s5 }
  0x44   : > { %1649 = dma.done.wait (%p1848_p0), %s469_s3, 128  }
  0x45   : > { %1651 = vsyncadd (%p1848_p0), %s469_s3, 4294967168  ;;  %s478_s0 = sand.u32 1, %s1795_s23   ;;  %s482_s27 = scalar_lea.vmem [#allocation7], %s1924_s5 }
  0x46   : > { %s479_s7 = scalar_lea.sflag [#allocation8], %s478_s0 }
  0x47   : > { %1653 = dma.done.wait (%p1848_p0), %s479_s7, 256  }
  0x48   : > { %1655 = vsyncadd (%p1848_p0), %s479_s7, 4294967040  ;;  %s492_s24 = scalar_lea.vmem [#allocation9], %s1924_s5 }
  0x49   : > { %1657 = dma.done.wait (%p67_p1), [#allocation11], 1024  }
  0x4a   : > { %1659 = vsyncadd (%p67_p1), [#allocation11], 4294966272 }
  0x4b   : > { %1661 = dma.done.wait (%p67_p1), [#allocation14], 1024  }
  0x4c   : > { %1663 = vsyncadd (%p67_p1), [#allocation14], 4294966272  ;;  %v570_v0 = vld [vmem:[#allocation12 + $0x18] sm:$0xff]  ;;  %v569_v1 = vld [vmem:[#allocation12 + $0x10] sm:$0xff]  ;;  %vm575_vm0 = vcmask 261120   ;;  %s1698_s16 = smov 112  }
  0x4d   : > { %591 = vmatpush.msra.mxu0 %v570_v0  ;;  %v673_v2 = vld [vmem:[#allocation10 + $0x18] sm:$0xff]  ;;  %v568_v3 = vld [vmem:[#allocation12 + $0x8] sm:$0xff]  ;;  %v672_v4 = vld [vmem:[#allocation10 + $0x10] sm:$0xff]  ;;  %s1699_s17 = smov 120   ;;  %s1700_s22 = smov 104   ;;  %vm663_vm1 = vcmask 64512  }
  0x4e   : > { %694 = vmatpush.msra.mxu2 %v673_v2  ;;  %v671_v5 = vld [vmem:[#allocation10 + $0x8] sm:$0xff]  ;;  %v567_v6 = vld [vmem:[#allocation12] sm:$0xff]  ;;  %v669_v9 = vld [vmem:[%s472_s9] sm:$0xff]  ;;  %s1701_s10 = smov 8   ;;  %s1702_s12 = smov 16  }
  0x4f   : > { %592 = vmatpush.msra.mxu0 %v569_v1  ;;  %v566_v7 = vld [vmem:[%s482_s27] sm:$0xff]  ;;  %v603_v10 = vld [vmem:[#allocation13 + $0x18] sm:$0xff]  ;;  %v602_v11 = vld [vmem:[#allocation13 + $0x10] sm:$0xff]  ;;  %s1703_s28 = smov 24   ;;  %s1241_s21 = sshll.u32 %s1682_s20, 3 }
  0x50   : > { %695 = vmatpush.msra.mxu2 %v672_v4  ;;  %v670_v8 = vld [vmem:[#allocation10] sm:$0xff]  ;;  %623 = vmatpush.msra.mxu1 %v603_v10  ;;  %v601_v12 = vld [vmem:[#allocation13 + $0x8] sm:$0xff]  ;;  %v599_v14 = vld [vmem:[%s492_s24] sm:$0xff]  ;;  %s1039_s9 = scalar_lea.hbm %s2037_s11, %s1241_s21  ;;  %s2082_s27 = sld [smem:[#allocation35_spill]] }
  0x51   : > { %593 = vmatpush.msra.mxu0 %v568_v3  ;;  %v600_v13 = vld [vmem:[#allocation13] sm:$0xff]  ;;  %v1366_v15 = vld [vmem:[%s2032_s6] ss:$0 sm:$0xff]  ;;  %s561_s24 = scalar_lea.vmem [#allocation16], %s1924_s5  ;;  %s1043_s14 = sshll.u32 %s1039_s9, 4  ;;  %s1044_s14 = int_to_ptr.hbm [resolvable:$true] %s1043_s14 }
  0x52   : > { %696 = vmatpush.msra.mxu2 %v671_v5  ;;  %624 = vmatpush.msra.mxu1 %v602_v11  ;;  %v1367_v18 = vld [vmem:[%s2030_s4] ss:$0 sm:$0xff]  ;;  %s1041_s23 = sshll.u32 %s561_s24, 4  ;;  %s1028_s29 = scalar_lea.sflag [#allocation6], %s1921_s15  ;;  %s1042_s23 = int_to_ptr.vmem [resolvable:$true] %s1041_s23 }
  0x53   : > { %594 = vmatpush.msra.mxu0 %v567_v6  ;;  %v1368_v32 = vld [vmem:[%s2034_s8] ss:$0 sm:$0xff]  ;;  %s1610_s20 = sshra.s32 %s1044_s14, 4  ;;  %s1616_s5 = scalar_lea.hbm %s2037_s11, 16  ;;  %s1611_s20 = int_to_ptr.hbm [resolvable:$true] %s1610_s20 }
  0x54   : > { %1228 = vmatmul.msk.f32.vlgmr.msra.gmra.mxu0 %vm575_vm0, %v566_v7  ;;  %697 = vmatpush.msra.mxu2 %v670_v8  ;;  %s1612_s25 = scalar_lea.hbm %s1611_s20, 8  ;;  %p1617_p10 = scmp.lt.s32.totalorder %s1611_s20, %s2037_s11 }
  0x55   : > { %1230 = vmatmul.msk.f32.vlgmr.msra.gmra.mxu2 %vm575_vm0, %v669_v9  ;;  %625 = vmatpush.msra.mxu1 %v601_v12  ;;  %p1613_p1 = scmp.ne.s32.totalorder %s1611_s20, %s1612_s25  ;;  %p1618_p11 = scmp.lt.s32.totalorder %s1616_s5, %s1612_s25 }
  0x57   : > { %626 = vmatpush.msra.mxu1 %v600_v13  ;;  %p1614_p3 = pnand %p1613_p1, %p1852_p2  ;;  %p1619_p12 = por %p1618_p11, %p1617_p10 }
  0x58   : > { %1229 = vmatmul.msk.f32.vlgmr.msra.gmra.mxu1 %vm575_vm0, %v599_v14 }
  0x59   : > { %p1615_p5 = pneg %p1614_p3 }
  0x5b   : > { %p1620_p13 = pnand %p1619_p12, %p1615_p5 }
  0xd1   : > { %v596_v16 = vpop.f32.mrf.mxu0 }
  0xd2   : > { %v597_v17 = vadd.f32 %v1366_v15, %v596_v16 }
  0xd4   : > { %631 = vxpose.xlu1.b32.start.end [1/1] (short) (narrow) %v597_v17, 32 }
  0xd5   : > { %v628_v33 = vpop.f32.mrf.mxu1 }
  0xd6   : > { %v629_v34 = vadd.f32 %v1368_v32, %v628_v33 }
  0xd8   : > { %v699_v19 = vpop.f32.mrf.mxu2  ;;  %668 = vst.msk [vmem:[#allocation3] sm:$0xff] %vm575_vm0, %v629_v34 }
  0xd9   : > { %v700_v20 = vadd.f32 %v1367_v18, %v699_v19 }
  0xdb   : > { %v702_v21 = vmul.f32 0.35355338, %v700_v20 }
  0xdd   : > { %842 = vrot.lane.b32.xlu0 %v702_v21, %s1698_s16 }
  0xdf   : > { %v707_v35 = vld [vmem:[#allocation3] sm:$0xff] }
  0xe0   : > { %816 = vrot.lane.b32.xlu2 %v707_v35, %s1699_s17 }
  0xe5   : > { %773 = vrot.lane.b32.xlu0 %v702_v21, %s1699_s17 }
  0xe8   : > { %884 = vrot.lane.b32.xlu2 %v707_v35, %s1698_s16 }
  0xed   : > { %952 = vrot.lane.b32.xlu0 %v707_v35, %s1700_s22 }
 0x13a   : > { %v817_v37 = vpop.permute.xlu2 %816 }
 0x13b   : > { %837 = vmatpush.msrb.mxu1 %v817_v37 }
 0x142   : > { %v885_v44 = vpop.permute.xlu2 %884 }
 0x146   : > { %910 = vrot.lane.b32.xlu1 %v702_v21, %s1700_s22 }
 0x14f   : > { %v843_v23 = vpop.permute.xlu0 %842 }
 0x157   : > { %v774_v26 = vpop.permute.xlu0 %773 }
 0x15f   : > { %v953_v10 = vpop.permute.xlu0 %952 }
 0x160   : > { %973 = vmatpush.msra.mxu1 %v953_v10 }
 0x178   : > { %v647_v22 = vpop.trf.xlu1 }
 0x179   : > { %664 = vst.msk [vmem:[#allocation2] sm:$0xff] %vm663_vm1, %v647_v22 }
 0x180   : > { %v648_v24 = vpop.trf.xlu1  ;;  %v703_v25 = vld [vmem:[#allocation2] sm:$0xff] }
 0x181   : > { %665 = vst.msk [vmem:[#allocation2 + $0x8] sm:$0xff] %vm663_vm1, %v648_v24  ;;  %727 = vmatpush.msra.mxu3 %v703_v25 }
 0x182   : > { %1231 = vmatmul.msk.f32.vlgmr.msra.gmra.mxu3 %vm663_vm1, %v702_v21 }
 0x183   : > { %768 = vmatpush.msrb.mxu3 %v707_v35 }
 0x185   : > { %905 = vmatpush.msra.mxu3 %v885_v44 }
 0x188   : > { %v649_v27 = vpop.trf.xlu1  ;;  %v704_v28 = vld [vmem:[#allocation2 + $0x8] sm:$0xff] }
 0x189   : > { %666 = vst.msk [vmem:[#allocation2 + $0x10] sm:$0xff] %vm663_vm1, %v649_v27  ;;  %792 = vmatpush.msrb.mxu0 %v704_v28 }
 0x18a   : > { %1233 = vmatmul.msk.f32.vlgmr.msrb.gmra.mxu0 %vm663_vm1, %v774_v26 }
 0x190   : > { %v705_v29 = vld [vmem:[#allocation2 + $0x10] sm:$0xff]  ;;  %v650_v30 = vpop.trf.xlu1 }
 0x191   : > { %861 = vmatpush.msrb.mxu2 %v705_v29  ;;  %667 = vst.msk [vmem:[#allocation2 + $0x18] sm:$0xff] %vm663_vm1, %v650_v30 }
 0x192   : > { %1235 = vmatmul.msk.f32.vlgmr.msrb.gmra.mxu2 %vm663_vm1, %v843_v23 }
 0x198   : > { %v706_v31 = vld [vmem:[#allocation2 + $0x18] sm:$0xff] }
 0x199   : > { %929 = vmatpush.msra.mxu0 %v706_v31 }
 0x1b8   : > { %v911_v36 = vpop.permute.xlu1 %910 }
 0x1b9   : > { %1237 = vmatmul.msk.f32.vlgmr.msra.gmra.mxu0 %vm663_vm1, %v911_v36 }
 0x205   : > { %v729_v38 = vpop.f32.mrf.mxu3 }
 0x206   : > { %v732_v39 = vsub.f32 0.0, %v729_v38 }
 0x207   : > { %v794_v40 = vpop.f32.mrf.mxu0 }
 0x208   : > { %v733_v41 = vmul.f32 1.442695, %v732_v39  ;;  %v797_v42 = vsub.f32 0.0, %v794_v40  ;;  %v998_v40 = vld [vmem:[#allocation15 + $0x18] sm:$0xff] }
 0x209   : > { %1018 = vmatpush.msra.mxu2 %v998_v40 }
 0x20a   : > { %1370 = vpow2.f32 %v733_v41  ;;  %v798_v43 = vmul.f32 1.442695, %v797_v42  ;;  %v997_v41 = vld [vmem:[#allocation15 + $0x10] sm:$0xff]  ;;  %v996_v42 = vld [vmem:[#allocation15 + $0x8] sm:$0xff] }
 0x20b   : > { %1019 = vmatpush.msra.mxu2 %v997_v41 }
 0x20c   : > { %1372 = vpow2.f32 %v798_v43  ;;  %v995_v43 = vld [vmem:[#allocation15] sm:$0xff] }
 0x20d   : > { %1020 = vmatpush.msra.mxu2 %v996_v42 }
 0x20f   : > { %1021 = vmatpush.msra.mxu2 %v995_v43 }
 0x210   : > { %v1371_v45 = vpop.eup %1370 }
 0x211   : > { %v735_v46 = vadd.f32 1.0, %v1371_v45 }
 0x212   : > { %v1373_v47 = vpop.eup %1372 }
 0x213   : > { %1374 = vrcp.f32 %v735_v46  ;;  %v800_v48 = vadd.f32 1.0, %v1373_v47  ;;  %v747_v57 = vand.u32 2147483648, %v735_v46  ;;  %v745_v59 = vand.u32 2147483647, %v735_v46 }
 0x214   : > { %vm741_vm3 = vweird.f32 %v735_v46 }
 0x215   : > { %1376 = vrcp.f32 %v800_v48  ;;  %v863_v49 = vpop.f32.mrf.mxu2  ;;  %vm806_vm4 = vweird.f32 %v800_v48  ;;  %v812_v61 = vand.u32 2147483648, %v800_v48  ;;  %v810_v1 = vand.u32 2147483647, %v800_v48 }
 0x216   : > { %v866_v50 = vsub.f32 0.0, %v863_v49  ;;  %v748_v3 = vor.u32 1.1754944e-38, %v747_v57  ;;  %vm746_vm7 = vcmp.eq.f32.partialorder %v745_v59, 8.507059e+37 }
 0x217   : > { %v813_v7 = vor.u32 1.1754944e-38, %v812_v61  ;;  %vm811_vm9 = vcmp.eq.f32.partialorder %v810_v1, 8.507059e+37 }
 0x218   : > { %v867_v51 = vmul.f32 1.442695, %v866_v50  ;;  %v1369_v50 = vld [vmem:[%s2082_s27] ss:$0 sm:$0xff] }
 0x219   : > { %v1375_v52 = vpop.eup %1374 }
 0x21a   : > { %1378 = vpow2.f32 %v867_v51  ;;  %v737_v53 = vmul.f32 %v1375_v52, %v735_v46  ;;  %vm742_vm2 = vweird.f32 %v1375_v52 }
 0x21b   : > { %v1377_v54 = vpop.eup %1376  ;;  %vm743_vm6 = vmor %vm741_vm3, %vm742_vm2 }
 0x21c   : > { %v738_v55 = vsub.f32 1.0, %v737_v53  ;;  %v802_v56 = vmul.f32 %v1377_v54, %v800_v48  ;;  %vm807_vm5 = vweird.f32 %v1377_v54 }
 0x21d   : > { %vm808_vm8 = vmor %vm806_vm4, %vm807_vm5  ;;  %vm991_vm4 = vcmask 130048   ;;  %vm993_vm5 = vcmask 195584  }
 0x21e   : > { %v739_v58 = vmul.f32 %v1375_v52, %v738_v55  ;;  %v803_v60 = vsub.f32 1.0, %v802_v56 }
 0x220   : > { %v1379_v62 = vpop.eup %1378  ;;  %v740_v63 = vadd.f32 %v1375_v52, %v739_v58  ;;  %v804_v0 = vmul.f32 %v1377_v54, %v803_v60 }
 0x221   : > { %v869_v2 = vadd.f32 1.0, %v1379_v62 }
 0x222   : > { %v744_v4 = vsel %vm743_vm6, %v1375_v52, %v740_v63  ;;  %v805_v5 = vadd.f32 %v1377_v54, %v804_v0 }
 0x223   : > { %1380 = vrcp.f32 %v869_v2  ;;  %v749_v6 = vsel %vm746_vm7, %v748_v3, %v744_v4  ;;  %v881_v14 = vand.u32 2147483648, %v869_v2  ;;  %v879_v16 = vand.u32 2147483647, %v869_v2 }
 0x224   : > { %1232 = vmatmul.msk.f32.vlgmr.msrb.gmra.mxu3 %vm663_vm1, %v749_v6  ;;  %v809_v8 = vsel %vm808_vm8, %v1377_v54, %v805_v5  ;;  %vm875_vm11 = vweird.f32 %v869_v2 }
 0x225   : > { %v814_v9 = vsel %vm811_vm9, %v813_v7, %v809_v8  ;;  %v882_v18 = vor.u32 1.1754944e-38, %v881_v14  ;;  %vm880_vm13 = vcmp.eq.f32.partialorder %v879_v16, 8.507059e+37 }
 0x226   : > { %1234 = vmatmul.msk.f32.vlgmr.msrb.gmra.mxu1 %vm663_vm1, %v814_v9 }
 0x229   : > { %v1381_v11 = vpop.eup %1380 }
 0x22a   : > { %v871_v12 = vmul.f32 %v1381_v11, %v869_v2  ;;  %vm876_vm10 = vweird.f32 %v1381_v11 }
 0x22b   : > { %vm877_vm12 = vmor %vm875_vm11, %vm876_vm10 }
 0x22c   : > { %v872_v13 = vsub.f32 1.0, %v871_v12 }
 0x22e   : > { %v873_v15 = vmul.f32 %v1381_v11, %v872_v13 }
 0x230   : > { %v874_v17 = vadd.f32 %v1381_v11, %v873_v15 }
 0x232   : > { %v878_v19 = vsel %vm877_vm12, %v1381_v11, %v874_v17 }
 0x233   : > { %v883_v20 = vsel %vm880_vm13, %v882_v18, %v878_v19 }
 0x234   : > { %1236 = vmatmul.msk.f32.vlgmr.msra.gmra.mxu3 %vm663_vm1, %v883_v20 }
 0x236   : > { %v931_v21 = vpop.f32.mrf.mxu0 }
 0x237   : > { %v934_v22 = vsub.f32 0.0, %v931_v21 }
 0x239   : > { %v935_v23 = vmul.f32 1.442695, %v934_v22 }
 0x23b   : > { %1382 = vpow2.f32 %v935_v23 }
 0x241   : > { %v1383_v24 = vpop.eup %1382 }
 0x242   : > { %v937_v25 = vadd.f32 1.0, %v1383_v24 }
 0x244   : > { %1384 = vrcp.f32 %v937_v25  ;;  %v949_v29 = vand.u32 2147483648, %v937_v25  ;;  %v947_v31 = vand.u32 2147483647, %v937_v25  ;;  %vm943_vm15 = vweird.f32 %v937_v25 }
 0x246   : > { %v950_v33 = vor.u32 1.1754944e-38, %v949_v29  ;;  %vm948_vm3 = vcmp.eq.f32.partialorder %v947_v31, 8.507059e+37 }
 0x24a   : > { %v1385_v26 = vpop.eup %1384 }
 0x24b   : > { %v939_v27 = vmul.f32 %v1385_v26, %v937_v25  ;;  %vm944_vm14 = vweird.f32 %v1385_v26 }
 0x24c   : > { %vm945_vm2 = vmor %vm943_vm15, %vm944_vm14 }
 0x24d   : > { %v940_v28 = vsub.f32 1.0, %v939_v27 }
 0x24f   : > { %v941_v30 = vmul.f32 %v1385_v26, %v940_v28 }
 0x251   : > { %v942_v32 = vadd.f32 %v1385_v26, %v941_v30 }
 0x253   : > { %v946_v34 = vsel %vm945_vm2, %v1385_v26, %v942_v32 }
 0x254   : > { %v951_v35 = vsel %vm948_vm3, %v950_v33, %v946_v34 }
 0x255   : > { %1238 = vmatmul.msk.f32.vlgmr.msra.gmra.mxu1 %vm663_vm1, %v951_v35 }
 0x2a3   : > { %v839_v36 = vpop.f32.mrf.mxu1 }
 0x2a4   : > { %979 = vrot.lane.b32.xlu2 %v839_v36, %s1701_s10 }
 0x2a7   : > { %v770_v37 = vpop.f32.mrf.mxu3 }
 0x2b7   : > { %v907_v38 = vpop.f32.mrf.mxu3 }
 0x2b8   : > { %983 = vrot.lane.b32.xlu0 %v907_v38, %s1702_s12 }
 0x2d2   : > { %v975_v39 = vpop.f32.mrf.mxu1 }
 0x2d3   : > { %987 = vrot.lane.b32.xlu2 %v975_v39, %s1703_s28 }
 0x2fe   : > { %v980_v44 = vpop.permute.xlu2 %979 }
 0x2ff   : > { %v990_v46 = vsel %vm663_vm1, %v770_v37, %v980_v44 }
 0x32a   : > { %v984_v45 = vpop.permute.xlu0 %983 }
 0x32b   : > { %v992_v47 = vsel %vm991_vm4, %v990_v46, %v984_v45 }
 0x32d   : > { %v988_v48 = vpop.permute.xlu2 %987 }
 0x32e   : > { %v994_v49 = vsel %vm993_vm5, %v992_v47, %v988_v48 }
 0x32f   : > { %1239 = vmatmul.msk.f32.vlgmr.msra.gmra.mxu2 %vm575_vm0, %v994_v49 }
 0x3b2   : > { %v1023_v51 = vpop.f32.mrf.mxu2 }
 0x3b3   : > { %v1024_v52 = vadd.f32 %v1369_v50, %v1023_v51 }
 0x3b5   : > { %1026 = vst.msk [vmem:[%s561_s24] sm:$0xff] %vm575_vm0, %v1024_v52 }
 0x3b6   : > { %1623 = shalt.err (!%p1620_p13)
}
 0x3b7   : > { %1266 = dma.vmem_to_hbm [thread:$0]  (%p1852_p2), %s1042_s23, 128, %s1044_s14, %s1028_s29  }
 0x3b8 PF: > { %s2083_s15 = sld [smem:[#allocation22_spill]]  ;;  %p1292_p0 = pnand %p1212_p6, %p1859_p7 }
 0x3b9   : > { %s2085_s10 = sld [smem:[#allocation24_spill]] }
 0x3ba   : > { %p1293_p4 = pneg %p1292_p0 }
 0x3be   : > { %s1055_s12 = sand.u32 1, %s2083_s15  }
 0x3bf   : > { %s1056_s28 = scalar_lea.sflag [#allocation6], %s1055_s12 }
 0x3c0   : > { %1665 = dma.done.wait (%p1293_p4), %s1056_s28, 128  }
 0x3c1   : > { %1667 = vsyncadd (%p1293_p4), %s1056_s28, 4294967168  ;;  %s32_s22 = sadd.s32 1, %s2085_s10   ;;  %s2086_s21 = sld [smem:[#allocation27_spill]] }
 0x3c2   : > { %p29_p9 = scmp.ge.s32.totalorder %s32_s22, 4   ;;  %s2087_s20 = sld [smem:[#allocation23_spill]] }
 0x3c3   : > { %s2088_s26 = sld [smem:[#allocation25_spill]]  ;;  %s2089_s17 = smov %s1674_s18 }
 0x3c4   : > { %s2090_s18 = smov %s1678_s19 }
 0x3c5   :  { %31 = sbr.rel (!%p29_p9) target bundleno = 18 (0x12), region = 153 }
 0x3c7   : > { %s2091_s19 = smov %s2086_s21 }
 0x3c9   : > { %s2092_s21 = smov %s2088_s26 }
 0x3ca   :  { %1062 = vsyncpa [#allocation5], 1 }
 0x3cb   :  { %1064 = vsyncpa [#allocation5 + $0x1], 1 }
 0x3cc   :  { %1065 = vsyncpa [#allocation8], 1 }
 0x3cd   :  { %1067 = vsyncpa [#allocation8 + $0x1], 1 }
 0x3ce   :  { %1068 = vsyncpa [#allocation11], 1 }
 0x3cf   :  { %1069 = vsyncpa [#allocation14], 1 }
 0x3d0   :  { %1070 = vsyncpa [#allocation6], 1 }
 0x3d1   :  { %1072 = vsyncpa [#allocation6 + $0x1], 1 }

</bundles_post_ra>
